<compile_context>
chip_gen: v7x
topology: tpu7x:2x2x1
jax: 0.10.0
libtpu: 0.0.40
codegen_flags: <defaults>
</compile_context>

<pallas_src>
import math

import jax
import jax.numpy as jnp
from jax.experimental import pallas as pl
from jax.experimental.pallas import tpu as pltpu


# ----------------------------------------------------------------------------
# Fused kernel: 3-layer MLP on every (x_i, y_i) pair of a batch tile, with the
# context-mean pulled in front of layer 3.  One grid step == `bb` batch rows.
# ----------------------------------------------------------------------------
def _latent_encoder_kernel(xy_ref, w1_ref, b1_ref, w2_ref, b2_ref,
                           w3_ref, b3_ref, s_ref):
    # xy_ref: (bb, Nc, in_dim) f32, all weights/biases f32, s_ref: (bb, s_dim)
    bb, nc, in_dim = xy_ref.shape
    h_dim = w2_ref.shape[0]
    rows = bb * nc
    inv_nc = 1.0 / nc                       # compile-time constant, no divide

    # (bb, Nc, d) -> (bb*Nc, d): lane dim unchanged and Nc % 8 == 0 is
    # guaranteed by the wrapper, so this is a free sublane-aligned merge.
    inp = xy_ref[...].reshape(rows, in_dim)

    # ---- Layer 1 on the VPU -------------------------------------------------
    # K = in_dim (= x_dim + y_dim, tiny) -> an MXU dot would be pure push/pop
    # latency.  in_dim broadcast-FMA terms keep the work in otherwise-idle VALU
    # slots and remove the only f32 MXU traffic.
    h = b1_ref[...]                                   # (1, h_dim), broadcasts
    for k in range(in_dim):                           # static, tiny trip count
        h = h + inp[:, k:k + 1] * w1_ref[k:k + 1, :]
    h = jnp.maximum(h, 0.0)                           # (rows, h_dim) f32

    # ---- Layer 2 on the MXU (f32 operands, f32 accumulation) ----------------
    h = jnp.dot(h, w2_ref[...], preferred_element_type=jnp.float32) + b2_ref[...]
    h = jnp.maximum(h, 0.0)

    # ---- Mean over context BEFORE layer 3 (exact by linearity) --------------
    # Reshape is sublane-aligned (Nc % 8 == 0); sum over context is an XLU
    # cross-sublane reduce.
    h_mean = jnp.sum(h.reshape(bb, nc, h_dim), axis=1) * inv_nc   # (bb, h_dim)

    # ---- Layer 3: a single tiny (bb, h) @ (h, s) matmul ----------------------
    s = jnp.dot(h_mean, w3_ref[...], preferred_element_type=jnp.float32) + b3_ref[...]
    s_ref[...] = s.astype(s_ref.dtype)


# ----------------------------------------------------------------------------
# Batch-block picker: largest divisor of B whose per-step VMEM footprint fits
# the budget.  No forced >=2 blocks on single-TC chips (v5e/v6e); on megacore
# parts (v7x) keep the grid count even so both TensorCores get equal work.
# ----------------------------------------------------------------------------
def _pick_batch_block(B, Nc, in_dim, h_dim, *, megacore=False,
                      vmem_budget_bytes=24 * 1024 * 1024):
    def step_bytes(bb):
        rows = bb * Nc
        inputs = 2 * rows * in_dim * 4        # double-buffered input block
        inter = 2 * rows * h_dim * 4          # h1 / h2 f32 intermediates
        outs = 2 * bb * h_dim * 4             # double-buffered output block
        return inputs + inter + outs

    divisors = [d for d in range(1, B + 1) if B % d == 0]
    fitting = [d for d in divisors if step_bytes(d) <= vmem_budget_bytes] or [1]

    if megacore and B > 1:
        even = [d for d in fitting if (B // d) >= 2 and (B // d) % 2 == 0]
        if even:
            return max(even)
    return max(fitting)


def latent_encoder(params, x_context, y_context, *, batch_block=None,
                   megacore=False):
    B, Nc, x_dim = x_context.shape
    _, _, y_dim = y_context.shape
    in_dim = x_dim + y_dim
    h_dim = params["w2"].shape[0]
    s_dim = params["w3"].shape[1]          # == h_dim (module requirement)

    # Sublane alignment so in-kernel reshapes are free (no per-step relayout).
    # TODO(synk): pad Nc to a multiple of 8 + mask the context mean for ragged Nc.
    assert Nc % 8 == 0, "Nc must be a multiple of 8"

    # Pack x and y into one input stream (single layer-1 weight, one DMA stream).
    xy = jnp.concatenate([x_context, y_context], axis=-1)

    bb = batch_block if batch_block is not None else _pick_batch_block(
        B, Nc, in_dim, h_dim, megacore=megacore)
    assert B % bb == 0, (B, bb)
    grid = (B // bb,)

    out = pl.pallas_call(
        _latent_encoder_kernel,
        out_shape=jax.ShapeDtypeStruct((B, s_dim), jnp.float32),
        grid=grid,
        in_specs=[
            pl.BlockSpec((bb, Nc, in_dim), lambda i: (i, 0, 0)),   # packed [x;y]
            pl.BlockSpec((in_dim, h_dim), lambda i: (0, 0)),       # w1
            pl.BlockSpec((1, h_dim), lambda i: (0, 0)),            # b1
            pl.BlockSpec((h_dim, h_dim), lambda i: (0, 0)),        # w2
            pl.BlockSpec((1, h_dim), lambda i: (0, 0)),            # b2
            pl.BlockSpec((h_dim, s_dim), lambda i: (0, 0)),        # w3
            pl.BlockSpec((1, s_dim), lambda i: (0, 0)),            # b3
        ],
        out_specs=pl.BlockSpec((bb, s_dim), lambda i: (i, 0)),
        compiler_params=pltpu.CompilerParams(
            dimension_semantics=("parallel",),
            vmem_limit_bytes=32 * 1024 * 1024,   # safe on v5e/v6e/v7x
        ),
    )(xy,
      params["w1"], params["b1"],
      params["w2"], params["b2"],
      params["w3"], params["b3"])
    return out


# ----------------------------------------------------------------------------
# Parameter init mimicking nn.Linear default (uniform +/- 1/sqrt(fan_in)).
# All parameters kept f32 (review: bf16 buys nothing at h_dim=32).
# ----------------------------------------------------------------------------
def init_params(key, x_dim, y_dim, h_dim):
    def linear(k, fan_in, fan_out):
        kw, kb = jax.random.split(k)
        bound = 1.0 / math.sqrt(fan_in)
        w = jax.random.uniform(kw, (fan_in, fan_out), jnp.float32, -bound, bound)
        b = jax.random.uniform(kb, (1, fan_out), jnp.float32, -bound, bound)
        return w, b

    k1, k2, k3 = jax.random.split(key, 3)
    w1, b1 = linear(k1, x_dim + y_dim, h_dim)
    w2, b2 = linear(k2, h_dim, h_dim)
    w3, b3 = linear(k3, h_dim, h_dim)      # last Linear outputs h_dim (== s_dim)
    return dict(w1=w1, b1=b1, w2=w2, b2=b2, w3=w3, b3=b3)


# ----------------------------------------------------------------------------
if __name__ == "__main__":
    B, Nc = 2, 8
    x_dim, y_dim = 2, 1
    h_dim = s_dim = 32    # module's .view(B, Nc, s_dim) requires s_dim == h_dim

    key = jax.random.PRNGKey(0)
    kp, kx, ky = jax.random.split(key, 3)

    params = init_params(kp, x_dim, y_dim, h_dim)
    x_context = jax.random.normal(kx, (B, Nc, x_dim), jnp.float32)
    y_context = jax.random.normal(ky, (B, Nc, y_dim), jnp.float32)

    s = latent_encoder(params, x_context, y_context)
    jax.block_until_ready(s)

    assert s.shape == (B, s_dim), s.shape
    assert jnp.all(jnp.isfinite(s))

    # pure-JAX f32 reference matching the PyTorch forward exactly
    def ref(xc, yc):
        inp = jnp.concatenate(
            [xc.reshape(-1, x_dim), yc.reshape(-1, y_dim)], axis=1)
        h = jnp.maximum(inp @ params["w1"] + params["b1"], 0.0)
        h = jnp.maximum(h @ params["w2"] + params["b2"], 0.0)
        s_i = (h @ params["w3"] + params["b3"]).reshape(B, Nc, h_dim)
        return jnp.mean(s_i, axis=1)

    s_ref = ref(x_context, y_context)
    assert jnp.allclose(s, s_ref, atol=1e-3, rtol=1e-3), float(
        jnp.max(jnp.abs(s - s_ref)))

    print("KERNEL_OK")
</pallas_src>

<mosaic_0001>
module attributes {stable_mosaic.version = 11 : i64} {
  func.func @_latent_encoder_kernel(%arg0: i32, %arg1: memref<2x8x3xf32, #tpu.memory_space<vmem>>, %arg2: memref<3x32xf32, #tpu.memory_space<vmem>>, %arg3: memref<1x32xf32, #tpu.memory_space<vmem>>, %arg4: memref<32x32xf32, #tpu.memory_space<vmem>>, %arg5: memref<1x32xf32, #tpu.memory_space<vmem>>, %arg6: memref<32x32xf32, #tpu.memory_space<vmem>>, %arg7: memref<1x32xf32, #tpu.memory_space<vmem>>, %arg8: memref<2x32xf32, #tpu.memory_space<vmem>>) attributes {dimension_semantics = [#tpu.dimension_semantics<parallel>], iteration_bounds = array<i64: 1>, scalar_prefetch = 0 : i64, scratch_operands = 0 : i64, tpu.core_type = #tpu.core_type<tc>, window_params = [{transform_indices = @transform_0, window_bounds = array<i64: 2, 8, 3>}, {pipeline_mode = #tpu.pipeline_mode<synchronous>, transform_indices = @transform_1, window_bounds = array<i64: 3, 32>}, {pipeline_mode = #tpu.pipeline_mode<synchronous>, transform_indices = @transform_2, window_bounds = array<i64: 1, 32>}, {pipeline_mode = #tpu.pipeline_mode<synchronous>, transform_indices = @transform_3, window_bounds = array<i64: 32, 32>}, {pipeline_mode = #tpu.pipeline_mode<synchronous>, transform_indices = @transform_4, window_bounds = array<i64: 1, 32>}, {pipeline_mode = #tpu.pipeline_mode<synchronous>, transform_indices = @transform_5, window_bounds = array<i64: 32, 32>}, {pipeline_mode = #tpu.pipeline_mode<synchronous>, transform_indices = @transform_6, window_bounds = array<i64: 1, 32>}, {transform_indices = @transform_7, window_bounds = array<i64: 2, 32>}]} {
    %c0 = arith.constant 0 : index
    %c0_0 = arith.constant 0 : index
    %c0_1 = arith.constant 0 : index
    %0 = vector.load %arg1[%c0, %c0_0, %c0_1] : memref<2x8x3xf32, #tpu.memory_space<vmem>>, vector<2x8x3xf32>
    %1 = vector.shape_cast %0 : vector<2x8x3xf32> to vector<16x3xf32>
    %c0_2 = arith.constant 0 : index
    %c0_3 = arith.constant 0 : index
    %2 = vector.load %arg3[%c0_2, %c0_3] : memref<1x32xf32, #tpu.memory_space<vmem>>, vector<1x32xf32>
    %3 = vector.extract_strided_slice %1 {offsets = [0, 0], sizes = [16, 1], strides = [1, 1]} : vector<16x3xf32> to vector<16x1xf32>
    %c0_4 = arith.constant 0 : index
    %c0_5 = arith.constant 0 : index
    %4 = vector.load %arg2[%c0_4, %c0_5] : memref<3x32xf32, #tpu.memory_space<vmem>>, vector<1x32xf32>
    %5 = vector.broadcast %3 : vector<16x1xf32> to vector<16x32xf32>
    %6 = vector.broadcast %4 : vector<1x32xf32> to vector<16x32xf32>
    %7 = arith.mulf %5, %6 : vector<16x32xf32>
    %8 = vector.broadcast %2 : vector<1x32xf32> to vector<16x32xf32>
    %9 = arith.addf %8, %7 : vector<16x32xf32>
    %10 = vector.extract_strided_slice %1 {offsets = [0, 1], sizes = [16, 1], strides = [1, 1]} : vector<16x3xf32> to vector<16x1xf32>
    %c1 = arith.constant 1 : index
    %c0_6 = arith.constant 0 : index
    %11 = vector.load %arg2[%c1, %c0_6] : memref<3x32xf32, #tpu.memory_space<vmem>>, vector<1x32xf32>
    %12 = vector.broadcast %10 : vector<16x1xf32> to vector<16x32xf32>
    %13 = vector.broadcast %11 : vector<1x32xf32> to vector<16x32xf32>
    %14 = arith.mulf %12, %13 : vector<16x32xf32>
    %15 = arith.addf %9, %14 : vector<16x32xf32>
    %16 = vector.extract_strided_slice %1 {offsets = [0, 2], sizes = [16, 1], strides = [1, 1]} : vector<16x3xf32> to vector<16x1xf32>
    %c2 = arith.constant 2 : index
    %c0_7 = arith.constant 0 : index
    %17 = vector.load %arg2[%c2, %c0_7] : memref<3x32xf32, #tpu.memory_space<vmem>>, vector<1x32xf32>
    %18 = vector.broadcast %16 : vector<16x1xf32> to vector<16x32xf32>
    %19 = vector.broadcast %17 : vector<1x32xf32> to vector<16x32xf32>
    %20 = arith.mulf %18, %19 : vector<16x32xf32>
    %21 = arith.addf %15, %20 : vector<16x32xf32>
    %cst = arith.constant 0.000000e+00 : f32
    %22 = vector.broadcast %cst : f32 to vector<16x32xf32>
    %23 = arith.maximumf %21, %22 : vector<16x32xf32>
    %c0_8 = arith.constant 0 : index
    %c0_9 = arith.constant 0 : index
    %24 = vector.load %arg4[%c0_8, %c0_9] : memref<32x32xf32, #tpu.memory_space<vmem>>, vector<32x32xf32>
    %cst_10 = arith.constant dense<0.000000e+00> : vector<16x32xf32>
    %25 = tpu.matmul %23, %24, %cst_10 {dimension_numbers = #tpu.dot_dimension_numbers<[1], [0], [0], [1], [0, 0, 1, 1], [], []>} : vector<16x32xf32>, vector<32x32xf32>, vector<16x32xf32> -> vector<16x32xf32>
    %c0_11 = arith.constant 0 : index
    %c0_12 = arith.constant 0 : index
    %26 = vector.load %arg5[%c0_11, %c0_12] : memref<1x32xf32, #tpu.memory_space<vmem>>, vector<1x32xf32>
    %27 = vector.broadcast %26 : vector<1x32xf32> to vector<16x32xf32>
    %28 = arith.addf %25, %27 : vector<16x32xf32>
    %cst_13 = arith.constant 0.000000e+00 : f32
    %29 = vector.broadcast %cst_13 : f32 to vector<16x32xf32>
    %30 = arith.maximumf %28, %29 : vector<16x32xf32>
    %31 = vector.shape_cast %30 : vector<16x32xf32> to vector<2x8x32xf32>
    %cst_14 = arith.constant dense<0.000000e+00> : vector<2x32xf32>
    %32 = vector.multi_reduction <add>, %31, %cst_14 [1] : vector<2x8x32xf32> to vector<2x32xf32>
    %cst_15 = arith.constant 1.250000e-01 : f32
    %33 = vector.broadcast %cst_15 : f32 to vector<2x32xf32>
    %34 = arith.mulf %32, %33 : vector<2x32xf32>
    %c0_16 = arith.constant 0 : index
    %c0_17 = arith.constant 0 : index
    %35 = vector.load %arg6[%c0_16, %c0_17] : memref<32x32xf32, #tpu.memory_space<vmem>>, vector<32x32xf32>
    %cst_18 = arith.constant dense<0.000000e+00> : vector<2x32xf32>
    %36 = tpu.matmul %34, %35, %cst_18 {dimension_numbers = #tpu.dot_dimension_numbers<[1], [0], [0], [1], [0, 0, 1, 1], [], []>} : vector<2x32xf32>, vector<32x32xf32>, vector<2x32xf32> -> vector<2x32xf32>
    %c0_19 = arith.constant 0 : index
    %c0_20 = arith.constant 0 : index
    %37 = vector.load %arg7[%c0_19, %c0_20] : memref<1x32xf32, #tpu.memory_space<vmem>>, vector<1x32xf32>
    %38 = vector.broadcast %37 : vector<1x32xf32> to vector<2x32xf32>
    %39 = arith.addf %36, %38 : vector<2x32xf32>
    %c0_21 = arith.constant 0 : index
    %c0_22 = arith.constant 0 : index
    %40 = vector.load %arg8[%c0_21, %c0_22] : memref<2x32xf32, #tpu.memory_space<vmem>>, vector<2x32xf32>
    tpu.vector_store %arg8[%c0_21, %c0_22], %39 {strides = array<i32>} : memref<2x32xf32, #tpu.memory_space<vmem>>, vector<2x32xf32>,
    return
  }
  func.func @transform_0(%arg0: i32) -> (i32, i32, i32) {
    %c0_i32 = arith.constant 0 : i32
    %c0_i32_0 = arith.constant 0 : i32
    %c0_i32_1 = arith.constant 0 : i32
    return %arg0, %c0_i32, %c0_i32_0 : i32, i32, i32
  }
  func.func @transform_1(%arg0: i32) -> (i32, i32) {
    %c0_i32 = arith.constant 0 : i32
    %c0_i32_0 = arith.constant 0 : i32
    %c0_i32_1 = arith.constant 0 : i32
    return %c0_i32, %c0_i32_0 : i32, i32
  }
  func.func @transform_2(%arg0: i32) -> (i32, i32) {
    %c0_i32 = arith.constant 0 : i32
    %c0_i32_0 = arith.constant 0 : i32
    %c0_i32_1 = arith.constant 0 : i32
    return %c0_i32, %c0_i32_0 : i32, i32
  }
  func.func @transform_3(%arg0: i32) -> (i32, i32) {
    %c0_i32 = arith.constant 0 : i32
    %c0_i32_0 = arith.constant 0 : i32
    %c0_i32_1 = arith.constant 0 : i32
    return %c0_i32, %c0_i32_0 : i32, i32
  }
  func.func @transform_4(%arg0: i32) -> (i32, i32) {
    %c0_i32 = arith.constant 0 : i32
    %c0_i32_0 = arith.constant 0 : i32
    %c0_i32_1 = arith.constant 0 : i32
    return %c0_i32, %c0_i32_0 : i32, i32
  }
  func.func @transform_5(%arg0: i32) -> (i32, i32) {
    %c0_i32 = arith.constant 0 : i32
    %c0_i32_0 = arith.constant 0 : i32
    %c0_i32_1 = arith.constant 0 : i32
    return %c0_i32, %c0_i32_0 : i32, i32
  }
  func.func @transform_6(%arg0: i32) -> (i32, i32) {
    %c0_i32 = arith.constant 0 : i32
    %c0_i32_0 = arith.constant 0 : i32
    %c0_i32_1 = arith.constant 0 : i32
    return %c0_i32, %c0_i32_0 : i32, i32
  }
  func.func @transform_7(%arg0: i32) -> (i32, i32) {
    %c0_i32 = arith.constant 0 : i32
    %c0_i32_0 = arith.constant 0 : i32
    return %arg0, %c0_i32 : i32, i32
  }
}

</mosaic_0001>

<bundles_post_ra>
// kernel: tpu_custom_call.1
= control target key start
LH: loop header
LB: loop body
LE: loop exit
PB: predicated region body
PF: predicated region fallthrough
CT: control target
= control target key end

     0   :  { %12 = vsyncpa [#allocation3], 0  ;;  %s602_s0 = inlined_call_operand.vmem [shape: f32[2,8,3], index: 0, kind: input, shape index: {}]   ;;  %s603_s1 = inlined_call_operand.hbm [shape: f32[3,32], index: 1, kind: input, shape index: {}]   ;;  %s604_s2 = inlined_call_operand.vmem [shape: f32[1,32], index: 2, kind: input, shape index: {}]   ;;  %s605_s3 = inlined_call_operand.vmem [shape: f32[32,32], index: 3, kind: input, shape index: {}]   ;;  %s606_s4 = inlined_call_operand.vmem [shape: f32[1,32], index: 4, kind: input, shape index: {}]   ;;  %s607_s5 = inlined_call_operand.hbm [shape: f32[32,32], index: 5, kind: input, shape index: {}]   ;;  %s608_s6 = inlined_call_operand.vmem [shape: f32[1,32], index: 6, kind: input, shape index: {}]   ;;  %s609_s7 = inlined_call_operand.hbm [shape: f32[2,32], index: 7, kind: output, shape index: {}]  }
   0x1   :  { %13 = vsyncpa [#allocation6], 0 }
   0x2   :  { %14 = vsyncpa [#allocation4], 0  ;;  %s476_s24 = smov [#allocation2]   ;;  %s477_s26 = smov [#allocation5]  }
   0x3   :  { %s23_s25 = sshll.u32 %s476_s24, 4  ;;  %s38_s27 = sshll.u32 %s477_s26, 4  ;;  %s24_s25 = int_to_ptr.vmem [resolvable:$true] %s23_s25  ;;  %s527_s27 = int_to_ptr.vmem [resolvable:$true] %s38_s27 }
   0x4   :  { %s404_s30 = scalar_lea.hbm %s603_s1, 64 }
   0x5   :  { %p405_p0 = scmp.ne.s32.totalorder %s603_s1, %s404_s30  ;;  %p408_p1 = scmp.lt.u32.totalorder %s404_s30, %s603_s1 }
   0x7   :  { %p410_p2 = pnand %p408_p1, %p405_p0 }
   0x9   :  { %413 = shalt.err (!%p410_p2)
}
   0xa   :  { %s414_s12 = scalar_lea.vmem %s24_s25, 64  ;;  %p419_p4 = scmp.lt.s32.totalorder %s24_s25, %s24_s25 }
   0xb   :  { %p415_p3 = scmp.ne.s32.totalorder %s24_s25, %s414_s12  ;;  %p420_p5 = scmp.lt.s32.totalorder %s414_s12, %s414_s12 }
   0xd   :  { %p421_p6 = por %p420_p5, %p419_p4 }
   0xf   :  { %p422_p7 = pnand %p421_p6, %p415_p3 }
  0x11   :  { %425 = shalt.err (!%p422_p7)
}
  0x12   :  { %26 = dma.hbm_to_vmem [thread:$0]  %s603_s1, 64, %s24_s25, [#allocation3]  }
  0x13   :  { %s426_s17 = scalar_lea.hbm %s607_s5, 512 }
  0x14   :  { %p427_p8 = scmp.ne.s32.totalorder %s607_s5, %s426_s17  ;;  %p430_p9 = scmp.lt.u32.totalorder %s426_s17, %s607_s5 }
  0x16   :  { %p432_p10 = pnand %p430_p9, %p427_p8 }
  0x18   :  { %435 = shalt.err (!%p432_p10)
}
  0x19   :  { %s436_s22 = scalar_lea.vmem %s527_s27, 512  ;;  %p441_p12 = scmp.lt.s32.totalorder %s527_s27, %s527_s27 }
  0x1a   :  { %p437_p11 = scmp.ne.s32.totalorder %s527_s27, %s436_s22  ;;  %p442_p13 = scmp.lt.s32.totalorder %s436_s22, %s436_s22 }
  0x1c   :  { %p443_p0 = por %p442_p13, %p441_p12 }
  0x1e   :  { %p444_p1 = pnand %p443_p0, %p437_p11 }
  0x20   :  { %447 = shalt.err (!%p444_p1)
}
  0x21   :  { %s478_s1 = smov 128   ;;  %s479_s23 = smov 8  }
  0x22   :  { %44 = dma.hbm_to_vmem [thread:$0]  %s607_s5, 512, %s527_s27, [#allocation6], %s478_s1, %s478_s1, %s479_s23  }
  0x23   :  { %470 = dma.done.wait [#allocation3], 64  }
  0x24   :  { %471 = vsyncadd [#allocation3], 4294967232 }
  0x25   :  { %472 = dma.done.wait [#allocation6], 512  }
  0x26   :  { %473 = vsyncadd [#allocation6], 4294966784  ;;  %v480_v0 = vmov 1   ;;  %v481_v1 = vmov 0   ;;  %v53_v2 = vld [vmem:[%s602_s0] sm:$0xff]  ;;  %v54_v3 = vld [vmem:[%s602_s0 + $0x8] sm:$0xff] }
  0x27   :  { %401 = vset.pattern.permute.xlu1 %v480_v0  ;;  %400 = vset.pattern.permute.xlu0 %v481_v1  ;;  %v117_v4 = vld [vmem:[%s605_s3] sm:$0xff]  ;;  %v118_v5 = vld [vmem:[%s605_s3 + $0x8] sm:$0xff]  ;;  %v482_v7 = vmov 2   ;;  %v119_v8 = vld [vmem:[%s605_s3 + $0x10] sm:$0xff]  ;;  %vm128_vm0 = vcmask 261120   ;;  %v483_v38 = vmov 0.0|0.0  }
  0x28   :  { %83 = vperm.xlu1 %401, %v53_v2   ;;  %59 = vperm.xlu0 %400, %v53_v2   ;;  %v375_v6 = vpack.c.bf16 %v118_v5, %v117_v4  ;;  %v120_v9 = vld [vmem:[%s605_s3 + $0x18] sm:$0xff]  ;;  %v333_v11 = vld [vmem:[#allocation2] ss:$0 sm:$0xff]  ;;  %v335_v15 = vld [vmem:[#allocation2 + $0x1] ss:$0 sm:$0xff]  ;;  %vm484_vm1 = vmmov 0  }
  0x29   :  { %v379_v10 = vpack.c.bf16 %v120_v9, %v119_v8  ;;  %v334_v16 = vld [vmem:[%s604_s2] ss:$0 sm:$0xff]  ;;  %v336_v24 = vld [vmem:[#allocation2 + $0x2] ss:$0 sm:$0xff]  ;;  %v228_v35 = vld [vmem:[#allocation5] sm:$0xff]  ;;  %383 = vmatprep.subr.bf16.mxu1 %v483_v38  ;;  %v485_v42 = vmov 0.0  }
  0x2a   :  { %376 = vmatprep.subr.bf16.mxu0 %v375_v6  ;;  %v229_v36 = vld [vmem:[#allocation5 + $0x8] sm:$0xff]  ;;  %v230_v39 = vld [vmem:[#allocation5 + $0x10] sm:$0xff]  ;;  %v231_v40 = vld [vmem:[#allocation5 + $0x18] sm:$0xff]  ;;  %372 = vmatprep.mubr.msk.f32.mxu1 %vm484_vm1, %v485_v42  ;;  %vm241_vm2 = vcmask 1041409   ;;  %s486_s16 = smov [#allocation7]   ;;  %vm315_vm3 = vcmask 254976  }
  0x2b   :  { %378 = vmatpush3.bf16.msra.mxu0 %v375_v6  ;;  %v384_v37 = vpack.c.bf16 %v229_v36, %v228_v35  ;;  %v387_v41 = vpack.c.bf16 %v231_v40, %v230_v39  ;;  %v337_v43 = vld [vmem:[%s606_s4] ss:$0 sm:$0xff]  ;;  %s323_s17 = sshll.u32 %s486_s16, 4  ;;  %s324_s17 = int_to_ptr.vmem [resolvable:$true] %s323_s17 }
  0x2c   :  { %87 = vperm.xlu1 %401, %v54_v3   ;;  %64 = vperm.xlu0 %400, %v54_v3   ;;  %s448_s18 = scalar_lea.vmem %s324_s17, 32  ;;  %p453_p3 = scmp.lt.s32.totalorder %s324_s17, %s324_s17 }
  0x2d   :  { %380 = vmatprep.subr.bf16.mxu0 %v379_v10  ;;  %385 = vmatpush3.bf16.msra.mxu1 %v384_v37  ;;  %p449_p2 = scmp.ne.s32.totalorder %s324_s17, %s448_s18  ;;  %p454_p4 = scmp.lt.s32.totalorder %s448_s18, %s448_s18 }
  0x2e   :  { %386 = vmatprep.subr.bf16.mxu1 %v483_v38 }
  0x2f   :  { %382 = vmatpush3.bf16.msra.mxu0 %v379_v10  ;;  %p455_p5 = por %p454_p4, %p453_p3 }
  0x30   :  { %403 = vset.pattern.permute.xlu1 %v482_v7  ;;  %402 = vset.pattern.permute.xlu0 %v482_v7 }
  0x31   :  { %104 = vperm.xlu1 %403, %v54_v3   ;;  %100 = vperm.xlu0 %402, %v53_v2   ;;  %v340_v3 = vld [vmem:[%s608_s6] ss:$0 sm:$0xff]  ;;  %p456_p6 = pnand %p455_p5, %p449_p2 }
  0x32   :  { %388 = vmatpush3.bf16.msra.mxu1 %v387_v41 }
  0xa7   :  { %v84_v12 = vpop.permute.xlu1 %83  ;;  %v60_v13 = vpop.permute.xlu0 %59 }
  0xa8   :  { %v71_v14 = vmul.f32 %v333_v11, %v60_v13  ;;  %v94_v20 = vmul.f32 %v335_v15, %v84_v12 }
  0xaa   :  { %v79_v21 = vadd.f32 %v334_v16, %v71_v14 }
  0xab   :  { %v88_v17 = vpop.permute.xlu1 %87  ;;  %v65_v18 = vpop.permute.xlu0 %64 }
  0xac   :  { %v72_v19 = vmul.f32 %v333_v11, %v65_v18  ;;  %v95_v22 = vmul.f32 %v335_v15, %v88_v17  ;;  %v96_v30 = vadd.f32 %v94_v20, %v79_v21 }
  0xae   :  { %v80_v23 = vadd.f32 %v334_v16, %v72_v19 }
  0xb0   :  { %v105_v25 = vpop.permute.xlu1 %104  ;;  %v97_v26 = vadd.f32 %v95_v22, %v80_v23  ;;  %v101_v27 = vpop.permute.xlu0 %100 }
  0xb1   :  { %v112_v28 = vmul.f32 %v336_v24, %v105_v25  ;;  %v111_v29 = vmul.f32 %v336_v24, %v101_v27 }
  0xb3   :  { %v114_v31 = vadd.f32 %v112_v28, %v97_v26  ;;  %v113_v32 = vadd.f32 %v111_v29, %v96_v30 }
  0xb5   :  { %v116_v33 = vmax.f32 %v114_v31, 0.0  ;;  %v115_v34 = vmax.f32 %v113_v32, 0.0 }
  0xb7   :  { %361 = vmatprep.mubr.msk.f32.mxu0 %vm128_vm0, %v115_v34 }
  0xb8   :  { %362 = vmatmul.mubr.msk.f32.vlgmr.msra.gmra.mrb[0].mxu0 %vm128_vm0, %v116_v33 }
 0x18b   :  { %v363_v44 = vpop.f32.mrb[0].mxu0 }
 0x18c   :  { %v207_v45 = vadd.f32 %v363_v44, %v337_v43  ;;  %v201_v46 = vpop.f32.mrb[1].mxu0 }
 0x18d   :  { %v202_v47 = vadd.f32 %v337_v43, %v201_v46 }
 0x18e   :  { %v211_v48 = vmax.f32 %v207_v45, 0.0 }
 0x18f   :  { %v210_v49 = vmax.f32 %v202_v47, 0.0 }
 0x190   :  { %v219_v50 = vsel %vm128_vm0, %v211_v48, 0.0 }
 0x191   :  { %v220_v51 = vrot.slane %v219_v50, 4  ;;  %v212_v52 = vsel %vm128_vm0, %v210_v49, 0.0 }
 0x192   :  { %v213_v53 = vrot.slane %v212_v52, 4 }
 0x193   :  { %v221_v54 = vadd.f32 %v220_v51, %v219_v50 }
 0x194   :  { %v214_v55 = vadd.f32 %v213_v53, %v212_v52 }
 0x195   :  { %v222_v56 = vrot.slane %v221_v54, 2 }
 0x196   :  { %v215_v57 = vrot.slane %v214_v55, 2 }
 0x197   :  { %v223_v58 = vadd.f32 %v222_v56, %v221_v54 }
 0x198   :  { %v216_v59 = vadd.f32 %v215_v57, %v214_v55 }
 0x199   :  { %v224_v60 = vrot.slane %v223_v58, 1 }
 0x19a   :  { %v217_v61 = vrot.slane %v216_v59, 1 }
 0x19b   :  { %v225_v62 = vadd.f32 %v224_v60, %v223_v58 }
 0x19c   :  { %v218_v63 = vadd.f32 %v217_v61, %v216_v59 }
 0x19d   :  { %v227_v0 = vmul.f32 0.125, %v225_v62 }
 0x19e   :  { %v226_v1 = vmul.f32 0.125, %v218_v63 }
 0x1a0   :  { %v242_v2 = vsel %vm241_vm2, %v227_v0, %v226_v1 }
 0x1a1   :  { %373 = vmatmul.mubr.msk.f32.vlgmr.msra.gmra.mrb[0].mxu1 %vm128_vm0, %v242_v2 }
 0x274   :  { %v311_v4 = vpop.f32.mrb[0].mxu1 }
 0x275   :  { %v312_v5 = vadd.f32 %v340_v3, %v311_v4  ;;  %v374_v6 = vpop.f32.mrb[1].mxu1 }
 0x277   :  { %316 = vst.msk [vmem:[#allocation7] sm:$0x3] %vm315_vm3, %v312_v5 }
 0x278   :  { %459 = shalt.err (!%p456_p6)
}
 0x279   :  { %s460_s21 = scalar_lea.hbm %s609_s7, 32 }
 0x27a   :  { %p461_p7 = scmp.ne.s32.totalorder %s609_s7, %s460_s21  ;;  %p464_p8 = scmp.lt.u32.totalorder %s460_s21, %s609_s7 }
 0x27c   :  { %p466_p9 = pnand %p464_p8, %p461_p7 }
 0x27e   :  { %469 = shalt.err (!%p466_p9)
}
 0x27f   :  { %326 = dma.vmem_to_hbm [thread:$0]  %s324_s17, 32, %s609_s7, [#allocation4]  }
 0x280   :  { %474 = dma.done.wait [#allocation4], 32  }
 0x281   :  { %475 = vsyncadd [#allocation4], 4294967264 }
 0x282   :  { %330 = vsyncpa [#allocation3], 1 }
 0x283   :  { %331 = vsyncpa [#allocation6], 1 }
 0x284   :  { %332 = vsyncpa [#allocation4], 1 }

</bundles_post_ra>
